<compile_context>
chip_gen: v7x
topology: tpu7x:2x2x1
jax: 0.10.0
libtpu: 0.0.40
codegen_flags: <defaults>
</compile_context>

<pallas_src>
import jax
import jax.numpy as jnp
import numpy as np
from jax import lax
from jax.experimental import pallas as pl
from jax.experimental.pallas import tpu as pltpu


def external_attention_kernel(x_ref, wk_ref, wv_ref, o_ref):
    """One grid step: a tile of TB batch elements, kept in (C, N) layout.

    x_ref:  (TB, C, N)  activations (channels on sublanes, pixels on lanes)
    wk_ref: (S, C)      mk weight (Conv1d(C->S, k=1) weight, squeezed) - VMEM resident
    wv_ref: (C, S)      mv weight (Conv1d(S->C, k=1) weight, squeezed) - VMEM resident
    o_ref:  (TB, C, N)  output activations
    """
    wk = wk_ref[...]                          # (S, C) native dtype (bf16 stays bf16)
    wv = wv_ref[...]                          # (C, S)
    wv_f32 = wv.astype(jnp.float32)           # tiny; hoisted out of the batch loop
    tb = x_ref.shape[0]

    def step(t, carry):
        x = x_ref[t]                          # (C, N) native dtype, dynamic batch index

        # mk: 1x1 conv == (S,C) @ (C,N) on the MXU, f32 accumulation.
        a = jnp.dot(wk, x, preferred_element_type=jnp.float32)          # (S, N) f32

        # Softmax over S (torch dim=1), kept factored:
        #   softmax[s, n] = e[s, n] * inv_colsum[n]
        m = jnp.max(a, axis=0, keepdims=True)                           # (1, N)
        e = jnp.exp(a - m)                                              # (S, N) f32
        colsum = jnp.sum(e, axis=0, keepdims=True)                      # (1, N)
        inv_colsum = 1.0 / colsum             # exact divide; tiny (1,N), accuracy-critical

        # Over-N normalisation (torch dim=2) folded into the mv weight:
        #   rowsum[s] = sum_n softmax[s, n] = (inv_colsum @ e^T)[s]
        rowsum = lax.dot_general(                                       # (1, S) matvec
            inv_colsum, e,
            dimension_numbers=(((1,), (1,)), ((), ())),
            preferred_element_type=jnp.float32)
        inv_rowsum = 1.0 / rowsum             # exact divide; tiny (1,S)

        # mv: (C,S) @ (S,N) with operands in the weight dtype (native bf16 MXU
        # path when the model is bf16); sums above were taken from f32 `e`.
        wv_scaled = (wv_f32 * inv_rowsum).astype(wv.dtype)              # (C, S)
        out = jnp.dot(wv_scaled, e.astype(wv.dtype),
                      preferred_element_type=jnp.float32)               # (C, N) f32

        # Column scale applied to the small (C,N) output, never to (S,N).
        o_ref[t] = (out * inv_colsum).astype(o_ref.dtype)
        return carry

    lax.fori_loop(0, tb, step, 0)


def _tpu_vmem_bytes(default=64 << 20):
    """Physical VMEM capacity, with a conservative fallback (interpret mode etc.)."""
    try:
        return int(pltpu.get_tpu_info().vmem_capacity_bytes)
    except Exception:
        return default


def _pick_batch_tile(B, C, N, S, itemsize, *, budget_bytes,
                     target_bytes=4 << 20, max_unroll=8):
    """Fuse batch elements per grid step until the working set reaches the
    target (amortise ~0.35us/step overhead) while staying inside the
    generation-derived VMEM budget AND keeping grid extent >= 2 (v7x has two
    TensorCores sharded over 'parallel' grid axes)."""
    # Per element: double-buffered x + out tiles plus f32 (S,N) intermediates
    # (a, e) and the bf16 copy of e for the second matmul.
    per_elem = 4 * C * N * itemsize + 2 * S * N * 4 + S * N * 2
    tb = 1
    max_tb = min(B, max_unroll, max(1, B // 2))   # keep B // tb >= 2
    for cand in range(2, max_tb + 1):
        if B % cand:
            continue
        if cand * per_elem > budget_bytes:
            break
        tb = cand
        if cand * per_elem >= target_bytes:
            break
    return tb


def external_attention(x_nchw, wk, wv, *, batch_tile=None):
    """x_nchw: (B, C, H, W); wk: (S, C); wv: (C, S). Returns (B, C, H, W).

    For a bandwidth-bound op like this, pass bf16 activations/weights when the
    model allows; the kernel keeps softmax math in f32 internally.
    """
    B, C, H, W = x_nchw.shape
    N = H * W
    S = wk.shape[0]
    assert wk.shape == (S, C) and wv.shape == (C, S)

    # (B,C,H,W) -> (B,C,N) is a free reshape: channels stay second-to-last,
    # pixels (N) land on the lane axis.
    x_bcn = x_nchw.reshape(B, C, N)

    # Generation-aware budgets: ~75% of VMEM as the scoped limit (<= ~48 MiB on
    # v7x, ~96 MiB on v5e/v6e), ~30% of VMEM as the fused-tile working-set cap.
    vmem_cap = _tpu_vmem_bytes()
    vmem_limit = int(min(max(vmem_cap * 3 // 4, 32 << 20), 112 << 20))
    if batch_tile is None:
        batch_tile = _pick_batch_tile(B, C, N, S, x_bcn.dtype.itemsize,
                                      budget_bytes=int(vmem_cap * 0.30))
    assert B % batch_tile == 0
    grid = (B // batch_tile,)

    out_bcn = pl.pallas_call(
        external_attention_kernel,
        out_shape=jax.ShapeDtypeStruct((B, C, N), x_nchw.dtype),
        grid_spec=pltpu.PrefetchScalarGridSpec(
            num_scalar_prefetch=0,
            grid=grid,
            in_specs=[
                pl.BlockSpec((batch_tile, C, N), lambda i: (i, 0, 0)),
                # Constant index_map -> weights DMA'd once, stay VMEM resident.
                pl.BlockSpec((S, C), lambda i: (0, 0)),
                pl.BlockSpec((C, S), lambda i: (0, 0)),
            ],
            out_specs=pl.BlockSpec((batch_tile, C, N), lambda i: (i, 0, 0)),
        ),
        compiler_params=pltpu.CompilerParams(
            dimension_semantics=("parallel",),
            vmem_limit_bytes=vmem_limit,
        ),
    )(x_bcn, wk, wv)

    return out_bcn.reshape(B, C, H, W)


def external_attention_ref(x_nchw, wk, wv):
    """Pure-JAX reference mirroring the PyTorch forward exactly (f32 matmuls)."""
    B, C, H, W = x_nchw.shape
    hp = jax.lax.Precision.HIGHEST
    x = x_nchw.reshape(B, C, H * W)                                   # (B, C, N)
    attn = jnp.einsum("sc,bcn->bsn", wk, x, precision=hp)             # mk
    attn = jax.nn.softmax(attn, axis=1)                               # softmax dim=1
    attn = attn / jnp.sum(attn, axis=2, keepdims=True)                # norm over dim=2
    out = jnp.einsum("cs,bsn->bcn", wv, attn, precision=hp)           # mv
    return out.reshape(B, C, H, W)


if __name__ == "__main__":
    B, C, H, W = 2, 4, 16, 16
    S = 64

    key = jax.random.PRNGKey(0)
    kx, kk, kv = jax.random.split(key, 3)
    x = jax.random.normal(kx, (B, C, H, W), dtype=jnp.float32)
    # Conv1d kernel-size-1 weights, squeezed: mk.weight -> (S, C), mv.weight -> (C, S).
    wk = jax.random.normal(kk, (S, C), dtype=jnp.float32) * (1.0 / np.sqrt(C))
    wv = jax.random.normal(kv, (C, S), dtype=jnp.float32) * (1.0 / np.sqrt(S))

    out = jax.block_until_ready(external_attention(x, wk, wv))
    ref = jax.block_until_ready(external_attention_ref(x, wk, wv))

    assert out.shape == (B, C, H, W)
    # Exact divides in the kernel + HIGHEST-precision reference: remaining
    # differences are f32 reassociation only.
    np.testing.assert_allclose(np.asarray(out), np.asarray(ref), rtol=2e-4, atol=2e-5)
    print("KERNEL_OK")
</pallas_src>

<mosaic_0001>
module attributes {stable_mosaic.version = 11 : i64} {
  func.func @external_attention_kernel(%arg0: i32, %arg1: memref<1x4x256xf32, #tpu.memory_space<vmem>>, %arg2: memref<64x4xf32, #tpu.memory_space<vmem>>, %arg3: memref<4x64xf32, #tpu.memory_space<vmem>>, %arg4: memref<1x4x256xf32, #tpu.memory_space<vmem>>) attributes {dimension_semantics = [#tpu.dimension_semantics<parallel>], iteration_bounds = array<i64: 2>, scalar_prefetch = 0 : i64, scratch_operands = 0 : i64, tpu.core_type = #tpu.core_type<tc>, window_params = [{transform_indices = @transform_0, window_bounds = array<i64: 1, 4, 256>}, {pipeline_mode = #tpu.pipeline_mode<synchronous>, transform_indices = @transform_1, window_bounds = array<i64: 64, 4>}, {pipeline_mode = #tpu.pipeline_mode<synchronous>, transform_indices = @transform_2, window_bounds = array<i64: 4, 64>}, {transform_indices = @transform_3, window_bounds = array<i64: 1, 4, 256>}]} {
    %c0 = arith.constant 0 : index
    %c0_0 = arith.constant 0 : index
    %0 = vector.load %arg2[%c0, %c0_0] : memref<64x4xf32, #tpu.memory_space<vmem>>, vector<64x4xf32>
    %c0_1 = arith.constant 0 : index
    %c0_2 = arith.constant 0 : index
    %1 = vector.load %arg3[%c0_1, %c0_2] : memref<4x64xf32, #tpu.memory_space<vmem>>, vector<4x64xf32>
    %c0_i32 = arith.constant 0 : i32
    %2 = arith.index_cast %c0_i32 : i32 to index
    %c0_3 = arith.constant 0 : index
    %c0_4 = arith.constant 0 : index
    %3 = vector.load %arg1[%2, %c0_3, %c0_4] : memref<1x4x256xf32, #tpu.memory_space<vmem>>, vector<1x4x256xf32>
    %4 = vector.shape_cast %3 : vector<1x4x256xf32> to vector<4x256xf32>
    %cst = arith.constant dense<0.000000e+00> : vector<64x256xf32>
    %5 = tpu.matmul %0, %4, %cst {dimension_numbers = #tpu.dot_dimension_numbers<[1], [0], [0], [1], [0, 0, 1, 1], [], []>} : vector<64x4xf32>, vector<4x256xf32>, vector<64x256xf32> -> vector<64x256xf32>
    %cst_5 = arith.constant dense<0xFF800000> : vector<256xf32>
    %6 = vector.multi_reduction <maximumf>, %5, %cst_5 [0] : vector<64x256xf32> to vector<256xf32>
    %7 = vector.shape_cast %6 : vector<256xf32> to vector<1x256xf32>
    %8 = vector.broadcast %7 : vector<1x256xf32> to vector<64x256xf32>
    %9 = arith.subf %5, %8 : vector<64x256xf32>
    %10 = math.exp %9 : vector<64x256xf32>
    %cst_6 = arith.constant dense<0.000000e+00> : vector<256xf32>
    %11 = vector.multi_reduction <add>, %10, %cst_6 [0] : vector<64x256xf32> to vector<256xf32>
    %12 = vector.shape_cast %11 : vector<256xf32> to vector<1x256xf32>
    %cst_7 = arith.constant 1.000000e+00 : f32
    %13 = vector.broadcast %cst_7 : f32 to vector<1x256xf32>
    %14 = arith.divf %13, %12 : vector<1x256xf32>
    %cst_8 = arith.constant dense<0.000000e+00> : vector<1x64xf32>
    %15 = tpu.matmul %14, %10, %cst_8 {dimension_numbers = #tpu.dot_dimension_numbers<[1], [1], [0], [0], [0, 0, 1, 0], [], []>} : vector<1x256xf32>, vector<64x256xf32>, vector<1x64xf32> -> vector<1x64xf32>
    %cst_9 = arith.constant 1.000000e+00 : f32
    %16 = vector.broadcast %cst_9 : f32 to vector<1x64xf32>
    %17 = arith.divf %16, %15 : vector<1x64xf32>
    %18 = vector.broadcast %17 : vector<1x64xf32> to vector<4x64xf32>
    %19 = arith.mulf %1, %18 : vector<4x64xf32>
    %cst_10 = arith.constant dense<0.000000e+00> : vector<4x256xf32>
    %20 = tpu.matmul %19, %10, %cst_10 {dimension_numbers = #tpu.dot_dimension_numbers<[1], [0], [0], [1], [0, 0, 1, 1], [], []>} : vector<4x64xf32>, vector<64x256xf32>, vector<4x256xf32> -> vector<4x256xf32>
    %21 = vector.broadcast %14 : vector<1x256xf32> to vector<4x256xf32>
    %22 = arith.mulf %20, %21 : vector<4x256xf32>
    %23 = arith.index_cast %c0_i32 : i32 to index
    %c0_11 = arith.constant 0 : index
    %c0_12 = arith.constant 0 : index
    %24 = vector.load %arg4[%23, %c0_11, %c0_12] : memref<1x4x256xf32, #tpu.memory_space<vmem>>, vector<1x4x256xf32>
    %25 = vector.shape_cast %24 : vector<1x4x256xf32> to vector<4x256xf32>
    %26 = vector.shape_cast %22 : vector<4x256xf32> to vector<1x4x256xf32>
    tpu.vector_store %arg4[%23, %c0_11, %c0_12], %26 {strides = array<i32>} : memref<1x4x256xf32, #tpu.memory_space<vmem>>, vector<1x4x256xf32>,
    %c1_i32 = arith.constant 1 : i32
    return
  }
  func.func @transform_0(%arg0: i32) -> (i32, i32, i32) {
    %c0_i32 = arith.constant 0 : i32
    %c0_i32_0 = arith.constant 0 : i32
    %c0_i32_1 = arith.constant 0 : i32
    return %arg0, %c0_i32, %c0_i32_0 : i32, i32, i32
  }
  func.func @transform_1(%arg0: i32) -> (i32, i32) {
    %c0_i32 = arith.constant 0 : i32
    %c0_i32_0 = arith.constant 0 : i32
    %c0_i32_1 = arith.constant 0 : i32
    return %c0_i32, %c0_i32_0 : i32, i32
  }
  func.func @transform_2(%arg0: i32) -> (i32, i32) {
    %c0_i32 = arith.constant 0 : i32
    %c0_i32_0 = arith.constant 0 : i32
    %c0_i32_1 = arith.constant 0 : i32
    return %c0_i32, %c0_i32_0 : i32, i32
  }
  func.func @transform_3(%arg0: i32) -> (i32, i32, i32) {
    %c0_i32 = arith.constant 0 : i32
    %c0_i32_0 = arith.constant 0 : i32
    %c0_i32_1 = arith.constant 0 : i32
    return %arg0, %c0_i32, %c0_i32_0 : i32, i32, i32
  }
}

</mosaic_0001>

<bundles_post_ra>
// kernel: tpu_custom_call.1
= control target key start
LH: loop header
LB: loop body
LE: loop exit
PB: predicated region body
PF: predicated region fallthrough
CT: control target
= control target key end

     0   :  { %8 = vsyncpa [#allocation3], 0  ;;  %s1038_s0 = inlined_call_operand.vmem [shape: f32[2,4,256], index: 0, kind: input, shape index: {}]   ;;  %s1039_s1 = inlined_call_operand.vmem [shape: f32[64,4], index: 1, kind: input, shape index: {}]   ;;  %s1040_s2 = inlined_call_operand.vmem [shape: f32[4,64], index: 2, kind: input, shape index: {}]   ;;  %s1041_s3 = inlined_call_operand.hbm [shape: f32[2,4,256], index: 3, kind: output, shape index: {}]  }
   0x1   :  { %10 = vsyncpa [#allocation3 + $0x1], 0  ;;  %s883_s12 = smov 0   ;;  %s885_s13 = smov 0  }
   0x2   :  { %s887_s14 = smov 0   ;;  %s889_s15 = smov 0  }
   0x3 LB: > { %s904_s16 = sadd.s32 4294967295, %s859_s15   ;;  %s661_s17 = sadd.s32 4294967294, %s859_s15   ;;  %s859_s15 = sphi %s889_s15, %s1047_s15   ;;  %s855_s14 = sphi %s887_s14, %s1046_s14   ;;  %s851_s13 = sphi %s885_s13, %s1045_s13   ;;  %s847_s12 = sphi %s883_s12, %s1044_s12  }
   0x4   : > { %s908_s18 = sadd.s32 1, %s859_s15   ;;  %s91_s19 = sadd.s32 1, %s855_s14 }
   0x5   : > { %s88_s20 = ssub.s32 %s859_s15, %s908_s18  ;;  %p101_p0 = scmp.ne.s32.totalorder %s855_s14, %s851_s13 }
   0x6   : > { %p89_p1 = scmp.eq.s32.totalorder %s88_s20, 0  ;;  %p102_p2 = scmp.eq.s32.totalorder %s904_s16, 1 }
   0x7   : > { %p107_p3 = scmp.ne.s32.totalorder %s851_s13, %s847_s12  ;;  %p108_p4 = scmp.eq.s32.totalorder %s661_s17, 1 }
   0x8   : > { %s919_s21 = scalar_select %p89_p1, %s855_s14, %s91_s19  }
   0x9   : > { %p921_p5 = por %p102_p2, %p101_p0  ;;  %p925_p6 = por %p108_p4, %p107_p3 }
   0xa   : > { %p664_p7 = scmp.ge.s32.totalorder %s859_s15, 1  ;;  %p140_p8 = scmp.lt.s32.totalorder %s859_s15, 3 }
   0xc   : > { %p141_p9 = pnand %p664_p7, %p140_p8 }
   0xd   : > { %p164_p10 = scmp.lt.s32.totalorder (!%p141_p9), %s904_s16, 1  ;;  %v861_v0 = vmov (!%p141_p9), 0.0   ;;  %vm206_vm0 = vcmask (!%p141_p9), 1043456   ;;  %v169_v3 = vld [vmem:[%s1039_s1] sm:$0xff] (!%p141_p9)  ;;  %vm181_vm1 = vcmask (!%p141_p9), 31744   ;;  %v170_v4 = vld [vmem:[%s1039_s1 + $0x8] sm:$0xff] (!%p141_p9) }
   0xe   : > { %144 = sbr.rel (%p141_p9) target bundleno = 802 (0x322), region = 32  ;;  %275 = vmatprep.mubr.f32.mxu0 (!%p141_p9), %v861_v0  ;;  %v171_v5 = vld [vmem:[%s1039_s1 + $0x10] sm:$0xff] (!%p141_p9)  ;;  %v172_v6 = vld [vmem:[%s1039_s1 + $0x18] sm:$0xff] (!%p141_p9)  ;;  %v173_v7 = vld [vmem:[%s1039_s1 + $0x20] sm:$0xff] (!%p141_p9)  ;;  %vm505_vm2 = vcmask (!%p141_p9), 523264   ;;  %s161_s29 = sand.u32 (!%p141_p9), 1, %s851_s13  }
   0xf   : > { %v174_v8 = vld [vmem:[%s1039_s1 + $0x28] sm:$0xff] (!%p141_p9)  ;;  %v175_v9 = vld [vmem:[%s1039_s1 + $0x30] sm:$0xff] (!%p141_p9)  ;;  %v176_v10 = vld [vmem:[%s1039_s1 + $0x38] sm:$0xff] (!%p141_p9)  ;;  %s665_s30 = sshll.u32 (!%p141_p9), %s161_s29, 3  ;;  %s685_s4 = sshll.u32 (!%p141_p9), %s904_s16, 7 }
  0x10   : > { %s163_s5 = scalar_lea.vmem (!%p141_p9), [#allocation2], %s665_s30  ;;  %s996_s9 = scalar_lea.hbm (!%p141_p9), %s1041_s3, %s685_s4 }
  0x11   : > { %s602_s6 = sshll.u32 (!%p141_p9), %s163_s5, 4  ;;  %s588_s10 = scalar_lea.sflag (!%p141_p9), [#allocation3], %s161_s29  ;;  %s998_s6 = int_to_ptr.vmem [resolvable:$true] %s602_s6 }
  0x12   : > { %s797_s11 = scalar_lea.vmem (!%p141_p9), %s998_s6, 128 }
  0x13   : > { %p798_p11 = scmp.ne.s32.totalorder (!%p141_p9), %s998_s6, %s797_s11 }
  0x15   : > { %s165_s24 = scalar_select %p164_p10, %s904_s16, 1 }
  0x16   : > { %p799_p12 = pnand %p798_p11, %p921_p5  ;;  %s862_s16 = smov [#allocation2]  }
  0x17   : > { %s684_s25 = sshll.u32 %s165_s24, 3  ;;  %s801_s17 = sshll.u32 %s862_s16, 4  ;;  %s802_s17 = int_to_ptr.vmem [resolvable:$false] %s801_s17 }
  0x18   : > { %s168_s28 = scalar_lea.vmem %s1038_s0, %s684_s25  ;;  %p800_p13 = pneg %p799_p12 }
  0x19   : > { %v178_v1 = vld [vmem:[%s168_s28] sm:$0xff]  ;;  %s803_s19 = scalar_lea.vmem %s802_s17, 256  ;;  %p804_p0 = scmp.lt.s32.totalorder %s998_s6, %s802_s17 }
  0x1a   : > { %v180_v2 = vcombine.high %v178_v1, %v178_v1  ;;  %p805_p1 = scmp.lt.s32.totalorder %s803_s19, %s797_s11 }
  0x1c   : > { %668 = vmatprep.subr.msk.mxu0 %vm206_vm0, %v180_v2  ;;  %p806_p2 = por %p805_p1, %p804_p0 }
  0x1d   : > { %669 = vmatpush1.msk.msra.mxu0 %vm206_vm0, %v178_v1 }
  0x1e   : > { %670 = vmatmul.mubr.msk.f32.vlgmr.msra.gmra.mrb[0].mxu0 %vm181_vm1, %v169_v3  ;;  %p807_p3 = pnand %p806_p2, %p800_p13 }
  0x1f   : > { %281 = vmatprep.mubr.f32.mxu0 %v861_v0 }
  0x22   : > { %671 = vmatmul.mubr.msk.f32.gmra.mrb[2].mxu0 %vm181_vm1, %v170_v4 }
  0x23   : > { %287 = vmatprep.mubr.f32.mxu0 %v861_v0 }
  0x26   : > { %672 = vmatmul.mubr.msk.f32.gmra.mrb[4].mxu0 %vm181_vm1, %v171_v5 }
  0x27   : > { %293 = vmatprep.mubr.f32.mxu0 %v861_v0 }
  0x2a   : > { %673 = vmatmul.mubr.msk.f32.gmra.mrb[6].mxu0 %vm181_vm1, %v172_v6 }
  0x2b   : > { %299 = vmatprep.mubr.f32.mxu0 %v861_v0 }
  0x2e   : > { %674 = vmatmul.mubr.msk.f32.gmra.mrb[8].mxu0 %vm181_vm1, %v173_v7 }
  0x2f   : > { %305 = vmatprep.mubr.f32.mxu0 %v861_v0 }
  0x32   : > { %675 = vmatmul.mubr.msk.f32.gmra.mrb[10].mxu0 %vm181_vm1, %v174_v8 }
  0x33   : > { %311 = vmatprep.mubr.f32.mxu0 %v861_v0 }
  0x36   : > { %676 = vmatmul.mubr.msk.f32.gmra.mrb[12].mxu0 %vm181_vm1, %v175_v9 }
  0x37   : > { %317 = vmatprep.mubr.f32.mxu0 %v861_v0 }
  0x3a   : > { %677 = vmatmul.mubr.msk.f32.gmra.mrb[14].mxu0 %vm181_vm1, %v176_v10 }
  0x3b   : > { %573 = vmatprep.mubr.f32.mxu0 %v861_v0 }
  0xf1   : > { %v277_v11 = vpop.f32.mrb[0].mxu0 }
  0xf2   : > { %v279_v12 = vpop.f32.mrb[1].mxu0 }
  0xf5   : > { %v283_v13 = vpop.f32.mrb[2].mxu0 }
  0xf6   : > { %v285_v14 = vpop.f32.mrb[3].mxu0 }
  0xf9   : > { %v968_v15 = vpop.f32.mrb[4].mxu0 }
  0xfa   : > { %v324_v16 = vmax.f32 %v277_v11, %v968_v15  ;;  %v291_v17 = vpop.f32.mrb[5].mxu0 }
  0xfb   : > { %v337_v18 = vmax.f32 %v279_v12, %v291_v17 }
  0xfd   : > { %v971_v19 = vpop.f32.mrb[6].mxu0 }
  0xfe   : > { %v325_v20 = vmax.f32 %v283_v13, %v971_v19  ;;  %v297_v21 = vpop.f32.mrb[7].mxu0 }
  0xff   : > { %v338_v22 = vmax.f32 %v285_v14, %v297_v21 }
 0x101   : > { %v974_v23 = vpop.f32.mrb[8].mxu0 }
 0x102   : > { %v326_v24 = vmax.f32 %v324_v16, %v974_v23  ;;  %v303_v25 = vpop.f32.mrb[9].mxu0 }
 0x103   : > { %v339_v26 = vmax.f32 %v337_v18, %v303_v25 }
 0x105   : > { %v977_v27 = vpop.f32.mrb[10].mxu0 }
 0x106   : > { %v327_v28 = vmax.f32 %v325_v20, %v977_v27  ;;  %v309_v29 = vpop.f32.mrb[11].mxu0 }
 0x107   : > { %v340_v30 = vmax.f32 %v338_v22, %v309_v29 }
 0x109   : > { %v980_v31 = vpop.f32.mrb[12].mxu0 }
 0x10a   : > { %v328_v32 = vmax.f32 %v326_v24, %v980_v31  ;;  %v315_v33 = vpop.f32.mrb[13].mxu0 }
 0x10b   : > { %v341_v34 = vmax.f32 %v339_v26, %v315_v33 }
 0x10d   : > { %v319_v35 = vpop.f32.mrb[14].mxu0 }
 0x10e   : > { %v329_v36 = vmax.f32 %v327_v28, %v319_v35  ;;  %v321_v37 = vpop.f32.mrb[15].mxu0 }
 0x10f   : > { %v342_v38 = vmax.f32 %v340_v30, %v321_v37 }
 0x110   : > { %v330_v39 = vmax.f32 %v328_v32, %v329_v36 }
 0x111   : > { %v343_v40 = vmax.f32 %v341_v34, %v342_v38 }
 0x112   : > { %v331_v41 = vrot.slane %v330_v39, 4 }
 0x113   : > { %v344_v42 = vrot.slane %v343_v40, 4 }
 0x114   : > { %v332_v43 = vmax.f32 %v330_v39, %v331_v41 }
 0x115   : > { %v345_v44 = vmax.f32 %v343_v40, %v344_v42 }
 0x116   : > { %v333_v45 = vrot.slane %v332_v43, 2 }
 0x117   : > { %v346_v46 = vrot.slane %v345_v44, 2 }
 0x118   : > { %v334_v47 = vmax.f32 %v332_v43, %v333_v45 }
 0x119   : > { %v347_v48 = vmax.f32 %v345_v44, %v346_v46 }
 0x11a   : > { %v335_v49 = vrot.slane %v334_v47, 1 }
 0x11b   : > { %v348_v50 = vrot.slane %v347_v48, 1 }
 0x11c   : > { %v336_v51 = vmax.f32 %v334_v47, %v335_v49 }
 0x11d   : > { %v349_v52 = vmax.f32 %v347_v48, %v348_v50 }
 0x11e   : > { %v364_v53 = vsub.f32 %v319_v35, %v336_v51  ;;  %v350_v54 = vsub.f32 %v277_v11, %v336_v51  ;;  %v352_v55 = vsub.f32 %v283_v13, %v336_v51  ;;  %v354_v56 = vsub.f32 %v968_v15, %v336_v51 }
 0x11f   : > { %v365_v57 = vsub.f32 %v321_v37, %v349_v52  ;;  %v351_v58 = vsub.f32 %v279_v12, %v349_v52  ;;  %v353_v59 = vsub.f32 %v285_v14, %v349_v52  ;;  %v355_v60 = vsub.f32 %v291_v17, %v349_v52 }
 0x120   : > { %v394_v61 = vmul.f32 1.442695, %v364_v53  ;;  %v357_v62 = vsub.f32 %v297_v21, %v349_v52  ;;  %v356_v2 = vsub.f32 %v971_v19, %v336_v51  ;;  %v366_v3 = vmul.f32 1.442695, %v350_v54 }
 0x121   : > { %v396_v63 = vmul.f32 1.442695, %v365_v57  ;;  %v368_v0 = vmul.f32 1.442695, %v351_v58  ;;  %v372_v1 = vmul.f32 1.442695, %v353_v59  ;;  %v359_v6 = vsub.f32 %v303_v25, %v349_v52 }
 0x122   : > { %759 = vpow2.f32 %v394_v61  ;;  %v370_v4 = vmul.f32 1.442695, %v352_v55  ;;  %v376_v5 = vmul.f32 1.442695, %v355_v60  ;;  %v361_v7 = vsub.f32 %v309_v29, %v349_v52 }
 0x123   : > { %761 = vpow2.f32 %v396_v63  ;;  %v358_v8 = vsub.f32 %v974_v23, %v336_v51  ;;  %v360_v9 = vsub.f32 %v977_v27, %v336_v51  ;;  %v363_v10 = vsub.f32 %v315_v33, %v349_v52 }
 0x124   : > { %763 = vpow2.f32 %v368_v0  ;;  %v380_v11 = vmul.f32 1.442695, %v357_v62  ;;  %v362_v12 = vsub.f32 %v980_v31, %v336_v51  ;;  %v374_v13 = vmul.f32 1.442695, %v354_v56 }
 0x125   : > { %765 = vpow2.f32 %v372_v1  ;;  %v378_v14 = vmul.f32 1.442695, %v356_v2  ;;  %v384_v15 = vmul.f32 1.442695, %v359_v6  ;;  %v388_v16 = vmul.f32 1.442695, %v361_v7 }
 0x126   : > { %767 = vpow2.f32 %v366_v3  ;;  %v382_v17 = vmul.f32 1.442695, %v358_v8  ;;  %v386_v18 = vmul.f32 1.442695, %v360_v9  ;;  %v392_v20 = vmul.f32 1.442695, %v363_v10 }
 0x127   : > { %769 = vpow2.f32 %v370_v4  ;;  %v390_v22 = vmul.f32 1.442695, %v362_v12  ;;  %v500_v10 = vlaneseq }
 0x128   : > { %771 = vpow2.f32 %v376_v5 }
 0x129   : > { %773 = vpow2.f32 %v380_v11  ;;  %v501_v12 = vshrl.u32 %v500_v10, 7 }
 0x12a   : > { %775 = vpow2.f32 %v374_v13 }
 0x12b   : > { %777 = vpow2.f32 %v378_v14  ;;  %v502_v13 = vsub.s32 0, %v501_v12 }
 0x12c   : > { %v760_v19 = vpop.eup %759  ;;  %779 = vpow2.f32 %v384_v15  ;;  %v177_v15 = vld [vmem:[%s1040_s2] sm:$0xf] }
 0x12d   : > { %v762_v21 = vpop.eup %761  ;;  %781 = vpow2.f32 %v388_v16 }
 0x12e   : > { %v764_v23 = vpop.eup %763  ;;  %783 = vpow2.f32 %v382_v17 }
 0x12f   : > { %v766_v24 = vpop.eup %765  ;;  %785 = vpow2.f32 %v386_v18 }
 0x130   : > { %v768_v25 = vpop.eup %767  ;;  %v411_v26 = vadd.f32 %v766_v24, %v764_v23  ;;  %v686_v27 = vpack.c.bf16 %v766_v24, %v764_v23  ;;  %787 = vpow2.f32 %v392_v20 }
 0x131   : > { %v770_v28 = vpop.eup %769  ;;  %789 = vpow2.f32 %v390_v22 }
 0x132   : > { %v772_v29 = vpop.eup %771  ;;  %687 = vmatprep.subr.bf16.mxu1 %v686_v27  ;;  %703 = vmatprep.subr.bf16.mxu0 %v686_v27  ;;  %v398_v30 = vadd.f32 %v770_v28, %v768_v25  ;;  %v688_v31 = vpack.c.bf16 %v770_v28, %v768_v25 }
 0x133   : > { %v774_v32 = vpop.eup %773  ;;  %v412_v33 = vadd.f32 %v772_v29, %v411_v26 }
 0x134   : > { %v776_v34 = vpop.eup %775  ;;  %689 = vmatpush1.bf16.xpose.msra.mxu1 %v688_v31  ;;  %705 = vmatpush1.bf16.msra.mxu0 %v688_v31  ;;  %v690_v35 = vpack.c.bf16 %v774_v32, %v772_v29 }
 0x135   : > { %v778_v36 = vpop.eup %777  ;;  %v399_v37 = vadd.f32 %v776_v34, %v398_v30  ;;  %v413_v38 = vadd.f32 %v774_v32, %v412_v33 }
 0x136   : > { %v780_v39 = vpop.eup %779  ;;  %691 = vmatprep.subr.bf16.mxu1 %v690_v35  ;;  %707 = vmatprep.subr.bf16.mxu0 %v690_v35  ;;  %v692_v40 = vpack.c.bf16 %v778_v36, %v776_v34 }
 0x137   : > { %v782_v41 = vpop.eup %781  ;;  %v400_v42 = vadd.f32 %v778_v36, %v399_v37  ;;  %v414_v43 = vadd.f32 %v780_v39, %v413_v38 }
 0x138   : > { %v784_v44 = vpop.eup %783  ;;  %709 = vmatpush1.bf16.msra.mxu0 %v692_v40  ;;  %v694_v45 = vpack.c.bf16 %v782_v41, %v780_v39 }
 0x139   : > { %v786_v46 = vpop.eup %785  ;;  %v401_v47 = vadd.f32 %v784_v44, %v400_v42  ;;  %v415_v48 = vadd.f32 %v782_v41, %v414_v43 }
 0x13a   : > { %v788_v49 = vpop.eup %787  ;;  %711 = vmatprep.subr.bf16.mxu0 %v694_v45  ;;  %v696_v50 = vpack.c.bf16 %v786_v46, %v784_v44 }
 0x13b   : > { %v790_v51 = vpop.eup %789  ;;  %v402_v52 = vadd.f32 %v786_v46, %v401_v47  ;;  %v698_v53 = vpack.c.bf16 %v762_v21, %v788_v49  ;;  %v416_v54 = vadd.f32 %v788_v49, %v415_v48 }
 0x13c   : > { %693 = vmatpush1.bf16.xpose.msra.mxu1 %v692_v40  ;;  %713 = vmatpush1.bf16.msra.mxu0 %v696_v50  ;;  %v700_v55 = vpack.c.bf16 %v760_v19, %v790_v51 }
 0x13d   : > { %695 = vmatprep.subr.bf16.mxu1 %v694_v45  ;;  %715 = vmatprep.subr.bf16.mxu0 %v698_v53  ;;  %v403_v56 = vadd.f32 %v790_v51, %v402_v52  ;;  %v417_v57 = vadd.f32 %v762_v21, %v416_v54 }
 0x13f   : > { %v418_v58 = vrot.slane %v417_v57, 4  ;;  %v404_v59 = vadd.f32 %v760_v19, %v403_v56 }
 0x140   : > { %717 = vmatpush1.bf16.msra.mxu0 %v700_v55 }
 0x141   : > { %v419_v60 = vadd.f32 %v418_v58, %v417_v57  ;;  %v405_v61 = vrot.slane %v404_v59, 4 }
 0x143   : > { %v420_v62 = vrot.slane %v419_v60, 2  ;;  %v406_v63 = vadd.f32 %v405_v61, %v404_v59 }
 0x144   : > { %697 = vmatpush1.bf16.xpose.msra.mxu1 %v696_v50 }
 0x145   : > { %699 = vmatprep.subr.bf16.mxu1 %v698_v53  ;;  %v421_v0 = vadd.f32 %v420_v62, %v419_v60  ;;  %v407_v1 = vrot.slane %v406_v63, 2 }
 0x147   : > { %v422_v2 = vrot.slane %v421_v0, 1  ;;  %v408_v3 = vadd.f32 %v407_v1, %v406_v63 }
 0x149   : > { %v423_v4 = vadd.f32 %v422_v2, %v421_v0  ;;  %v409_v5 = vrot.slane %v408_v3, 1 }
 0x14b   : > { %791 = vrcp.f32 %v423_v4  ;;  %v410_v6 = vadd.f32 %v409_v5, %v408_v3 }
 0x14c   : > { %701 = vmatpush1.bf16.xpose.msra.mxu1 %v700_v55 }
 0x14d   : > { %793 = vrcp.f32 %v410_v6 }
 0x155   : > { %v792_v7 = vpop.eup %791 }
 0x156   : > { %492 = vmatprep.mubr.f32.mxu1 %v792_v7 }
 0x157   : > { %v794_v8 = vpop.eup %793 }
 0x158   : > { %493 = vmatmul.mubr.f32.vlgmr.msra.gmra.mrb[0].mxu1 %v794_v8 }
 0x22b   : > { %v494_v9 = vpop.f32.mrb[0].mxu1 }
 0x22c   : > { %795 = vrcp.f32 %v494_v9  ;;  %v496_v11 = vpop.f32.mrb[1].mxu1 }
 0x236   : > { %v796_v14 = vpop.eup %795 }
 0x237   : > { %v503_v16 = vrot.slane %v796_v14, %v502_v13 }
 0x239   : > { %v504_v17 = vmul.f32 %v503_v16, %v177_v15 }
 0x23b   : > { %678 = vmatmul.mubr.msk.f32.vlgmr.msra.gmra.mrb[16].mxu0 %vm505_vm2, %v504_v17 }
 0x30e   : > { %v575_v18 = vpop.f32.mrb[16].mxu0 }
 0x30f   : > { %v580_v19 = vmul.f32 %v794_v8, %v575_v18  ;;  %v577_v20 = vpop.f32.mrb[17].mxu0 }
 0x310   : > { %v581_v21 = vmul.f32 %v792_v7, %v577_v20 }
 0x312   : > { %v584_v22 = vcombine.low %v580_v19, %v581_v21 }
 0x314   : > { %586 = vst [vmem:[%s163_s5] sm:$0xff] %v584_v22 }
 0x315   : > { %810 = shalt.err (!%p807_p3)
}
 0x316   : > { %s811_s20 = scalar_lea.hbm %s996_s9, 128  ;;  %s815_s26 = scalar_lea.hbm %s1041_s3, 256 }
 0x317   : > { %p812_p4 = scmp.ne.s32.totalorder %s996_s9, %s811_s20  ;;  %p816_p9 = scmp.lt.u32.totalorder %s996_s9, %s1041_s3 }
 0x318   : > { %p817_p10 = scmp.lt.u32.totalorder %s815_s26, %s811_s20  ;;  %p819_p12 = scmp.lt.u32.totalorder %s811_s20, %s996_s9 }
 0x319   : > { %p813_p7 = pnand %p812_p4, %p921_p5 }
 0x31a   : > { %p818_p11 = por %p817_p10, %p816_p9 }
 0x31b   : > { %p814_p8 = pneg %p813_p7 }
 0x31c   : > { %p820_p13 = por %p819_p12, %p818_p11 }
 0x31e   : > { %p821_p0 = pnand %p820_p13, %p814_p8 }
 0x320   : > { %824 = shalt.err (!%p821_p0)
}
 0x321   : > { %718 = dma.vmem_to_hbm [thread:$0]  (%p921_p5), %s998_s6, 128, %s996_s9, %s588_s10  }
 0x322 PF: > { %p724_p1 = scmp.ge.s32.totalorder %s859_s15, 2  ;;  %s614_s29 = sand.u32 1, %s847_s12  }
 0x323   : > { %s615_s30 = scalar_lea.sflag [#allocation3], %s614_s29 }
 0x324   : > { %p721_p2 = pnand %p724_p1, %p925_p6 }
 0x326   : > { %842 = dma.done.wait (!%p721_p2), %s615_s30, 128  }
 0x327   : > { %844 = vsyncadd (!%p721_p2), %s615_s30, 4294967168  ;;  %p13_p3 = scmp.ge.s32.totalorder %s908_s18, 4   ;;  %s1044_s12 = smov %s851_s13 }
 0x328   : > { %s1045_s13 = smov %s855_s14  ;;  %s1046_s14 = smov %s919_s21 }
 0x329   : > { %s1047_s15 = smov %s908_s18  ;;  %15 = sbr.rel (!%p13_p3) target bundleno = 3 (0x3), region = 67 }
 0x330   :  { %620 = vsyncpa [#allocation3], 1 }
 0x331   :  { %622 = vsyncpa [#allocation3 + $0x1], 1 }

</bundles_post_ra>
